<compile_context>
chip_gen: v7x
topology: tpu7x:2x2x1
jax: 0.10.0
libtpu: 0.0.40
codegen_flags: <defaults>
</compile_context>

<pallas_src>
import jax
import jax.numpy as jnp
from jax.experimental import pallas as pl
from jax.experimental.pallas import tpu as pltpu


def _round_up(x, m):
    return ((x + m - 1) // m) * m


def _cdiv(a, b):
    return -(-a // b)


def _tpu_vmem_bytes():
    """Physical per-core VMEM bytes, with a conservative fallback."""
    try:
        info = pltpu.get_tpu_info()
        return int(getattr(info, "vmem_capacity_bytes", 64 * 1024 * 1024))
    except Exception:
        return 64 * 1024 * 1024


def _block_spec(shape, index_map, buffer_count=None):
    """BlockSpec helper; requests explicit buffer depth when supported."""
    if buffer_count is None:
        return pl.BlockSpec(shape, index_map)
    try:
        return pl.BlockSpec(shape, index_map,
                            pipeline_mode=pl.Buffered(buffer_count))
    except (TypeError, AttributeError):
        # Older jax without pipeline_mode / Buffered: fall back to defaults.
        return pl.BlockSpec(shape, index_map)


def _pick_tm(rows, kp, hp, cap_rows, vmem_budget_bytes):
    """Largest row tile (multiple of 16 sublanes) <= cap that fits the budget."""
    tm = _round_up(min(cap_rows, _round_up(rows, 16)), 16)
    # Double-buffered bf16 activation tile + double-buffered f32 output tile.
    per_row_bytes = 2 * kp * 2 + 2 * hp * 4
    while tm > 16 and tm * per_row_bytes > vmem_budget_bytes:
        tm = _round_up(tm // 2, 16)
    return max(tm, 16)


def fused_dual_linear(x0, x1, w_stack, b_stack, h_out, *, tm_cap=None):
    """Compute [x0 @ W0 + b0, x1 @ W1 + b1] in one pallas_call.

    x0: (M0, H) f32, x1: (M1, H) f32  — the two activation streams.
    w_stack: (2, Kp, Hp) bf16         — zero-padded (in, out) weights.
    b_stack: (2, 1, Hp) f32           — zero-padded biases.
    h_out:   logical output width (= hidden_size).
    Returns (y0, y1) f32 of shapes (M0, h_out), (M1, h_out).
    """
    M0, H = x0.shape
    M1, _ = x1.shape
    _, Kp, Hp = w_stack.shape

    # ---- generation-aware sizing -------------------------------------------
    phys_vmem = _tpu_vmem_bytes()
    big_vmem = phys_vmem >= 120 * 1024 * 1024           # v5e / v6e: 128 MiB
    vmem_limit = (96 if big_vmem else 32) * 1024 * 1024  # v7x: 64 MiB physical
    row_cap = tm_cap if tm_cap is not None else (2048 if big_vmem else 512)

    # Resident-but-not-streamed bytes: single-buffered weight, bias, slack.
    fixed_bytes = Kp * Hp * 2 + 2 * Hp * 4 + (1 << 20)
    budget = max((int(vmem_limit * 0.7) - fixed_bytes) // 2,
                 16 * (2 * Kp * 2 + 2 * Hp * 4))
    TM0 = _pick_tm(M0, Kp, Hp, row_cap, budget)
    TM1 = _pick_tm(M1, Kp, Hp, row_cap, budget)
    nt0, nt1 = _cdiv(M0, TM0), _cdiv(M1, TM1)
    M0p, M1p = nt0 * TM0, nt1 * TM1
    n_steps = nt0 + nt1

    # ---- operand prep: zero-pad rows / K, cast MXU operands to bf16 ---------
    x0p = jnp.pad(x0, ((0, M0p - M0), (0, Kp - H))).astype(jnp.bfloat16)
    x1p = jnp.pad(x1, ((0, M1p - M1), (0, Kp - H))).astype(jnp.bfloat16)

    # ---- index maps ----------------------------------------------------------
    # Steps [0, nt0) process stream 0; steps [nt0, nt0+nt1) process stream 1.
    # The inactive stream's input index is frozen (no redundant DMA); its output
    # is parked on a trailing dump tile (block nt0 / nt1), so every *real*
    # output block is written by exactly one grid step — safe under a v7x
    # two-core "parallel" split regardless of where the split lands.
    def x0_map(i):
        return (jnp.minimum(i, nt0 - 1), 0)

    def x1_map(i):
        return (jnp.maximum(i - nt0, 0), 0)

    def wb_map(i):
        return (jnp.where(i < nt0, 0, 1), 0, 0)

    def o0_map(i):
        return (jnp.where(i < nt0, i, nt0), 0)

    def o1_map(i):
        return (jnp.where(i < nt0, nt1, i - nt0), 0)

    def kernel(x0_ref, x1_ref, w_ref, b_ref, o0_ref, o1_ref):
        i = pl.program_id(0)

        @pl.when(i < nt0)
        def _():
            acc = jnp.dot(x0_ref[...], w_ref[...],
                          preferred_element_type=jnp.float32)
            o0_ref[...] = (acc + b_ref[...]).astype(o0_ref.dtype)

        @pl.when(i >= nt0)
        def _():
            acc = jnp.dot(x1_ref[...], w_ref[...],
                          preferred_element_type=jnp.float32)
            o1_ref[...] = (acc + b_ref[...]).astype(o1_ref.dtype)

    flops = 2 * (M0p + M1p) * Kp * Hp
    bytes_accessed = ((M0p + M1p) * Kp * 2                       # bf16 acts in
                      + 2 * Kp * Hp * 2 + 2 * Hp * 4             # weights/bias
                      + ((nt0 + 1) * TM0 + (nt1 + 1) * TM1) * Hp * 4)  # f32 out

    o0, o1 = pl.pallas_call(
        kernel,
        out_shape=(
            jax.ShapeDtypeStruct(((nt0 + 1) * TM0, Hp), jnp.float32),
            jax.ShapeDtypeStruct(((nt1 + 1) * TM1, Hp), jnp.float32),
        ),
        grid_spec=pltpu.PrefetchScalarGridSpec(
            num_scalar_prefetch=0,
            grid=(n_steps,),
            in_specs=[
                pl.BlockSpec((TM0, Kp), x0_map),
                pl.BlockSpec((TM1, Kp), x1_map),
                # Weight block index changes exactly once per kernel; a single
                # buffer saves Kp*Hp*2 bytes of VMEM (matters on v7x's 64 MiB).
                _block_spec((None, Kp, Hp), wb_map, buffer_count=1),
                pl.BlockSpec((None, 1, Hp), wb_map),
            ],
            out_specs=[
                pl.BlockSpec((TM0, Hp), o0_map),
                pl.BlockSpec((TM1, Hp), o1_map),
            ],
        ),
        compiler_params=pltpu.CompilerParams(
            dimension_semantics=("parallel",),
            vmem_limit_bytes=vmem_limit,
        ),
        cost_estimate=pl.CostEstimate(
            flops=flops, transcendentals=0, bytes_accessed=bytes_accessed),
    )(x0p, x1p, w_stack, b_stack)

    # The caller needs exact logical shapes; slicing off lane/row/dump padding
    # is the only remaining copy (per-stream, no concatenated-slab offsets).
    return o0[:M0, :h_out], o1[:M1, :h_out]


class DynamicPointerNetworkPallas:
    """JAX/Pallas port of DynamicPointerNetwork."""

    def __init__(self, hidden_size, key):
        self.hidden_size = H = hidden_size
        self.kp = _round_up(H, 128)   # contraction dim, zero-padded (dense K)
        self.hp = _round_up(H, 128)   # output dim, zero-padded (full-lane st)
        ks = jax.random.split(key, 6)
        bound = 1.0 / (H ** 0.5)

        def init_linear(kw, kb):
            # torch nn.Linear stores (out, in); keep the transposed (in, out)
            # layout so the kernel computes x @ W + b.
            w = jax.random.uniform(kw, (H, H), jnp.float32, -bound, bound)
            b = jax.random.uniform(kb, (H,), jnp.float32, -bound, bound)
            return w, b

        # linear_voc_embedding exists in __init__ but is dead in forward.
        self.w_voc, self.b_voc = init_linear(ks[0], ks[1])
        self.w_ocr, self.b_ocr = init_linear(ks[2], ks[3])
        self.w_dec, self.b_dec = init_linear(ks[4], ks[5])

        pad_k, pad_n = self.kp - H, self.hp - H

        def pack(w, b):
            wp = jnp.pad(w, ((0, pad_k), (0, pad_n))).astype(jnp.bfloat16)
            bp = jnp.pad(b, (0, pad_n)).astype(jnp.float32).reshape(1, self.hp)
            return wp, bp

        w_ocr_p, b_ocr_p = pack(self.w_ocr, self.b_ocr)
        w_dec_p, b_dec_p = pack(self.w_dec, self.b_dec)
        # MXU operands in bf16; biases stay f32 (added after the f32 accumulate).
        self.w_stack = jnp.stack([w_ocr_p, w_dec_p])   # (2, Kp, Hp) bf16
        self.b_stack = jnp.stack([b_ocr_p, b_dec_p])   # (2, 1, Hp)  f32

    def __call__(self, out_decoder, ocr_embedding):
        """
        out_decoder   : (BS, num_obj + num_ocr + num_ocr + top_K, hidden_size)
        ocr_embedding : (BS, num_ocr, hidden_size)
        """
        B1, T1, H = ocr_embedding.shape
        B2, T2, _ = out_decoder.shape
        x_flat, y_flat = fused_dual_linear(
            ocr_embedding.reshape(B1 * T1, H),
            out_decoder.reshape(B2 * T2, H),
            self.w_stack, self.b_stack, H)
        return x_flat.reshape(B1, T1, H), y_flat.reshape(B2, T2, H)


if __name__ == "__main__":
    key = jax.random.PRNGKey(0)
    k_param, k_dec, k_ocr = jax.random.split(key, 3)

    hidden_size = 32
    BS = 2
    num_obj, num_ocr, top_K = 4, 8, 4
    T_dec = num_obj + num_ocr + num_ocr + top_K  # 24

    out_decoder = jax.random.normal(k_dec, (BS, T_dec, hidden_size), jnp.float32)
    ocr_embedding = jax.random.normal(k_ocr, (BS, num_ocr, hidden_size), jnp.float32)

    model = DynamicPointerNetworkPallas(hidden_size, k_param)
    x, y = model(out_decoder, ocr_embedding)
    jax.block_until_ready((x, y))

    # Reference 1: bf16-operand reference (matches kernel numerics tightly).
    def ref_bf16(a, w, b):
        a16 = a.astype(jnp.bfloat16).astype(jnp.float32)
        w16 = w.astype(jnp.bfloat16).astype(jnp.float32)
        return a16 @ w16 + b

    x_ref16 = ref_bf16(ocr_embedding, model.w_ocr, model.b_ocr)
    y_ref16 = ref_bf16(out_decoder, model.w_dec, model.b_dec)
    assert jnp.allclose(x, x_ref16, atol=2e-3, rtol=2e-3), "ocr linear mismatch"
    assert jnp.allclose(y, y_ref16, atol=2e-3, rtol=2e-3), "decoder linear mismatch"

    # Reference 2: original f32 math (loose tol — bf16 MXU cast is intentional).
    x_ref = ocr_embedding @ model.w_ocr + model.b_ocr
    y_ref = out_decoder @ model.w_dec + model.b_dec
    assert jnp.allclose(x, x_ref, atol=5e-2, rtol=5e-2), "ocr linear drift vs f32"
    assert jnp.allclose(y, y_ref, atol=5e-2, rtol=5e-2), "decoder drift vs f32"

    # Also exercise the multi-tile path (several row tiles in one stream, the
    # weight switch mid-grid, dump-tile parking) with a small forced tile cap.
    x2, y2 = fused_dual_linear(
        ocr_embedding.reshape(-1, hidden_size),
        out_decoder.reshape(-1, hidden_size),
        model.w_stack, model.b_stack, hidden_size, tm_cap=16)
    jax.block_until_ready((x2, y2))
    assert jnp.allclose(x2.reshape(x.shape), x, atol=1e-5, rtol=1e-5), "tiled ocr mismatch"
    assert jnp.allclose(y2.reshape(y.shape), y, atol=1e-5, rtol=1e-5), "tiled decoder mismatch"

    print("KERNEL_OK")
</pallas_src>

<mosaic_0001>
module attributes {stable_mosaic.version = 11 : i64} {
  func.func @kernel(%arg0: i32, %arg1: memref<16x128xbf16, #tpu.memory_space<vmem>>, %arg2: memref<48x128xbf16, #tpu.memory_space<vmem>>, %arg3: memref<1x128x128xbf16, #tpu.memory_space<vmem>>, %arg4: memref<1x1x128xf32, #tpu.memory_space<vmem>>, %arg5: memref<16x128xf32, #tpu.memory_space<vmem>>, %arg6: memref<48x128xf32, #tpu.memory_space<vmem>>) attributes {dimension_semantics = [#tpu.dimension_semantics<parallel>], iteration_bounds = array<i64: 2>, scalar_prefetch = 0 : i64, scratch_operands = 0 : i64, tpu.core_type = #tpu.core_type<tc>, window_params = [{transform_indices = @transform_0, window_bounds = array<i64: 16, 128>}, {transform_indices = @transform_1, window_bounds = array<i64: 48, 128>}, {pipeline_mode = #tpu.pipeline_mode<synchronous>, transform_indices = @transform_2, window_bounds = array<i64: 1, 128, 128>}, {transform_indices = @transform_3, window_bounds = array<i64: 1, 1, 128>}, {transform_indices = @transform_4, window_bounds = array<i64: 16, 128>}, {transform_indices = @transform_5, window_bounds = array<i64: 48, 128>}]} {
    %c1_i32 = arith.constant 1 : i32
    %0 = arith.cmpi slt, %arg0, %c1_i32 : i32
    %1 = arith.extui %0 : i1 to i32
    %c0_i32 = arith.constant 0 : i32
    %2 = arith.cmpi ne, %1, %c0_i32 : i32
    scf.if %2 {
      %c0 = arith.constant 0 : index
      %c0_2 = arith.constant 0 : index
      %6 = vector.load %arg1[%c0, %c0_2] : memref<16x128xbf16, #tpu.memory_space<vmem>>, vector<16x128xbf16>
      %c0_3 = arith.constant 0 : index
      %c0_4 = arith.constant 0 : index
      %c0_5 = arith.constant 0 : index
      %7 = vector.load %arg3[%c0_3, %c0_4, %c0_5] : memref<1x128x128xbf16, #tpu.memory_space<vmem>>, vector<1x128x128xbf16>
      %8 = vector.shape_cast %7 : vector<1x128x128xbf16> to vector<128x128xbf16>
      %cst = arith.constant dense<0.000000e+00> : vector<16x128xf32>
      %9 = tpu.matmul %6, %8, %cst {dimension_numbers = #tpu.dot_dimension_numbers<[1], [0], [0], [1], [0, 0, 1, 1], [], []>} : vector<16x128xbf16>, vector<128x128xbf16>, vector<16x128xf32> -> vector<16x128xf32>
      %c0_6 = arith.constant 0 : index
      %c0_7 = arith.constant 0 : index
      %c0_8 = arith.constant 0 : index
      %10 = vector.load %arg4[%c0_6, %c0_7, %c0_8] : memref<1x1x128xf32, #tpu.memory_space<vmem>>, vector<1x1x128xf32>
      %11 = vector.shape_cast %10 : vector<1x1x128xf32> to vector<1x128xf32>
      %12 = vector.broadcast %11 : vector<1x128xf32> to vector<16x128xf32>
      %13 = arith.addf %9, %12 : vector<16x128xf32>
      %c0_9 = arith.constant 0 : index
      %c0_10 = arith.constant 0 : index
      %14 = vector.load %arg5[%c0_9, %c0_10] : memref<16x128xf32, #tpu.memory_space<vmem>>, vector<16x128xf32>
      tpu.vector_store %arg5[%c0_9, %c0_10], %13 {strides = array<i32>} : memref<16x128xf32, #tpu.memory_space<vmem>>, vector<16x128xf32>,
    } else {
    }
    %c1_i32_0 = arith.constant 1 : i32
    %3 = arith.cmpi sge, %arg0, %c1_i32_0 : i32
    %4 = arith.extui %3 : i1 to i32
    %c0_i32_1 = arith.constant 0 : i32
    %5 = arith.cmpi ne, %4, %c0_i32_1 : i32
    scf.if %5 {
      %c0 = arith.constant 0 : index
      %c0_2 = arith.constant 0 : index
      %6 = vector.load %arg2[%c0, %c0_2] : memref<48x128xbf16, #tpu.memory_space<vmem>>, vector<48x128xbf16>
      %c0_3 = arith.constant 0 : index
      %c0_4 = arith.constant 0 : index
      %c0_5 = arith.constant 0 : index
      %7 = vector.load %arg3[%c0_3, %c0_4, %c0_5] : memref<1x128x128xbf16, #tpu.memory_space<vmem>>, vector<1x128x128xbf16>
      %8 = vector.shape_cast %7 : vector<1x128x128xbf16> to vector<128x128xbf16>
      %cst = arith.constant dense<0.000000e+00> : vector<48x128xf32>
      %9 = tpu.matmul %6, %8, %cst {dimension_numbers = #tpu.dot_dimension_numbers<[1], [0], [0], [1], [0, 0, 1, 1], [], []>} : vector<48x128xbf16>, vector<128x128xbf16>, vector<48x128xf32> -> vector<48x128xf32>
      %c0_6 = arith.constant 0 : index
      %c0_7 = arith.constant 0 : index
      %c0_8 = arith.constant 0 : index
      %10 = vector.load %arg4[%c0_6, %c0_7, %c0_8] : memref<1x1x128xf32, #tpu.memory_space<vmem>>, vector<1x1x128xf32>
      %11 = vector.shape_cast %10 : vector<1x1x128xf32> to vector<1x128xf32>
      %12 = vector.broadcast %11 : vector<1x128xf32> to vector<48x128xf32>
      %13 = arith.addf %9, %12 : vector<48x128xf32>
      %c0_9 = arith.constant 0 : index
      %c0_10 = arith.constant 0 : index
      %14 = vector.load %arg6[%c0_9, %c0_10] : memref<48x128xf32, #tpu.memory_space<vmem>>, vector<48x128xf32>
      tpu.vector_store %arg6[%c0_9, %c0_10], %13 {strides = array<i32>} : memref<48x128xf32, #tpu.memory_space<vmem>>, vector<48x128xf32>,
    } else {
    }
    return
  }
  func.func @transform_0(%arg0: i32) -> (i32, i32) {
    %c0_i32 = arith.constant 0 : i32
    %0 = arith.minsi %arg0, %c0_i32 : i32
    %c0_i32_0 = arith.constant 0 : i32
    %c0_i32_1 = arith.constant 0 : i32
    return %0, %c0_i32_0 : i32, i32
  }
  func.func @transform_1(%arg0: i32) -> (i32, i32) {
    %c1_i32 = arith.constant 1 : i32
    %0 = arith.subi %arg0, %c1_i32 : i32
    %c0_i32 = arith.constant 0 : i32
    %1 = arith.maxsi %0, %c0_i32 : i32
    %c0_i32_0 = arith.constant 0 : i32
    %c0_i32_1 = arith.constant 0 : i32
    return %1, %c0_i32_0 : i32, i32
  }
  func.func @transform_2(%arg0: i32) -> (i32, i32, i32) {
    %c1_i32 = arith.constant 1 : i32
    %0 = arith.cmpi slt, %arg0, %c1_i32 : i32
    %c0_i32 = arith.constant 0 : i32
    %c1_i32_0 = arith.constant 1 : i32
    %1 = arith.select %0, %c0_i32, %c1_i32_0 : i32
    %c0_i32_1 = arith.constant 0 : i32
    %c0_i32_2 = arith.constant 0 : i32
    %c0_i32_3 = arith.constant 0 : i32
    return %1, %c0_i32_1, %c0_i32_2 : i32, i32, i32
  }
  func.func @transform_3(%arg0: i32) -> (i32, i32, i32) {
    %c1_i32 = arith.constant 1 : i32
    %0 = arith.cmpi slt, %arg0, %c1_i32 : i32
    %c0_i32 = arith.constant 0 : i32
    %c1_i32_0 = arith.constant 1 : i32
    %1 = arith.select %0, %c0_i32, %c1_i32_0 : i32
    %c0_i32_1 = arith.constant 0 : i32
    %c0_i32_2 = arith.constant 0 : i32
    %c0_i32_3 = arith.constant 0 : i32
    return %1, %c0_i32_1, %c0_i32_2 : i32, i32, i32
  }
  func.func @transform_4(%arg0: i32) -> (i32, i32) {
    %c1_i32 = arith.constant 1 : i32
    %0 = arith.cmpi slt, %arg0, %c1_i32 : i32
    %c1_i32_0 = arith.constant 1 : i32
    %1 = arith.select %0, %arg0, %c1_i32_0 : i32
    %c0_i32 = arith.constant 0 : i32
    %c0_i32_1 = arith.constant 0 : i32
    return %1, %c0_i32 : i32, i32
  }
  func.func @transform_5(%arg0: i32) -> (i32, i32) {
    %c1_i32 = arith.constant 1 : i32
    %0 = arith.cmpi slt, %arg0, %c1_i32 : i32
    %c1_i32_0 = arith.constant 1 : i32
    %1 = arith.subi %arg0, %c1_i32_0 : i32
    %c1_i32_1 = arith.constant 1 : i32
    %2 = arith.select %0, %c1_i32_1, %1 : i32
    %c0_i32 = arith.constant 0 : i32
    %c0_i32_2 = arith.constant 0 : i32
    return %2, %c0_i32 : i32, i32
  }
}

</mosaic_0001>

<bundles_post_ra>
// kernel: tpu_custom_call.1
= control target key start
LH: loop header
LB: loop body
LE: loop exit
PB: predicated region body
PF: predicated region fallthrough
CT: control target
= control target key end

     0   :  { %s2080_s0 = inlined_call_operand.hbm [shape: bf16[16,128], index: 0, kind: input, shape index: {}]   ;;  %s2081_s1 = inlined_call_operand.hbm [shape: bf16[48,128], index: 1, kind: input, shape index: {}]   ;;  %s2082_s2 = inlined_call_operand.hbm [shape: bf16[2,128,128], index: 2, kind: input, shape index: {}]   ;;  %s2083_s3 = inlined_call_operand.vmem [shape: f32[2,1,128], index: 3, kind: input, shape index: {}]   ;;  %s2084_s4 = inlined_call_operand.hbm [shape: f32[32,128], index: 4, kind: output, shape index: {0}]   ;;  %s2085_s5 = inlined_call_operand.hbm [shape: f32[96,128], index: 5, kind: output, shape index: {1}]  }
   0x1   :  { %2122 = sst [smem:[#allocation33_spill]] %s2080_s0 }
   0x2   :  { %2123 = sst [smem:[#allocation34_spill]] %s2082_s2 }
   0x3   :  { %2124 = sst [smem:[#allocation35_spill]] %s2083_s3 }
   0x4   :  { %2125 = sst [smem:[#allocation36_spill]] %s2084_s4 }
   0x5   :  { %2126 = sst [smem:[#allocation37_spill]] %s2085_s5 }
   0x6   :  { %11 = vsyncpa [#allocation3], 0 }
   0x7   :  { %13 = vsyncpa [#allocation3 + $0x1], 0 }
   0x8   :  { %14 = vsyncpa [#allocation6], 0 }
   0x9   :  { %16 = vsyncpa [#allocation6 + $0x1], 0 }
   0xa   :  { %17 = vsyncpa [#allocation4], 0 }
   0xb   :  { %19 = vsyncpa [#allocation4 + $0x1], 0 }
   0xc   :  { %20 = vsyncpa [#allocation10], 0 }
   0xd   :  { %22 = vsyncpa [#allocation10 + $0x1], 0  ;;  %s1532_s18 = smov 0   ;;  %s1534_s19 = smov 0  }
   0xe   :  { %s1536_s20 = smov 0   ;;  %s1538_s21 = smov 0  }
   0xf   :  { %s1540_s22 = smov 0   ;;  %s1542_s23 = smov 0  }
  0x10   :  { %s1544_s24 = smov 0   ;;  %s1546_s25 = smov 0  }
  0x11   :  { %s1548_s26 = smov 0   ;;  %s1550_s27 = smov 0  }
  0x12   :  { %s1552_s28 = smov 0   ;;  %s1554_s29 = smov 0  }
  0x13   :  { %s1556_s30 = smov 0   ;;  %s1558_s6 = smov 0  }
  0x14   :  { %s1560_s7 = smov 0   ;;  %s1562_s8 = smov 0  }
  0x15 LB: > { %2127 = sst [smem:[#allocation16_spill]] %s1427_s18  ;;  %s1611_s9 = sadd.s32 4294967295, %s1487_s8   ;;  %s1487_s8 = sphi %s1562_s8, %s2211_s8   ;;  %s1483_s7 = sphi %s1560_s7, %s2210_s7   ;;  %s1479_s6 = sphi %s1558_s6, %s2209_s6   ;;  %s1475_s30 = sphi %s1556_s30, %s2208_s30   ;;  %s1471_s29 = sphi %s1554_s29, %s2207_s29   ;;  %s1467_s28 = sphi %s1552_s28, %s2206_s28   ;;  %s1463_s27 = sphi %s1550_s27, %s2197_s27   ;;  %s1459_s26 = sphi %s1548_s26, %s2196_s26   ;;  %s1455_s25 = sphi %s1546_s25, %s2195_s25   ;;  %s1451_s24 = sphi %s1544_s24, %s2205_s24   ;;  %s1447_s23 = sphi %s1542_s23, %s2204_s23   ;;  %s1443_s22 = sphi %s1540_s22, %s2203_s22   ;;  %s1439_s21 = sphi %s1538_s21, %s2193_s21   ;;  %s1435_s20 = sphi %s1536_s20, %s2202_s20   ;;  %s1431_s19 = sphi %s1534_s19, %s2201_s19   ;;  %s1427_s18 = sphi %s1532_s18, %s2191_s18  }
  0x16   : > { %2128 = sst [smem:[#allocation17_spill]] %s1431_s19  ;;  %s868_s10 = sadd.s32 4294967294, %s1487_s8  }
  0x17   : > { %2129 = sst [smem:[#allocation18_spill]] %s1439_s21  ;;  %s1615_s11 = sadd.s32 1, %s1487_s8  }
  0x18   : > { %2130 = sst [smem:[#allocation19_spill]] %s1443_s22  ;;  %p94_p0 = scmp.ge.s32.totalorder %s1487_s8, 1 }
  0x19   : > { %2131 = sst [smem:[#allocation20_spill]] %s1455_s25  ;;  %p96_p1 = scmp.ge.s32.totalorder %s1615_s11, 1 }
  0x1a   : > { %2132 = sst [smem:[#allocation21_spill]] %s1459_s26  ;;  %p2086_p2 = scmp.eq.s32.totalorder %s1611_s9, 0 }
  0x1b   : > { %2133 = sst [smem:[#allocation22_spill]] %s1467_s28  ;;  %p114_p3 = scmp.ne.s32.totalorder %s1455_s25, %s1451_s24 }
  0x1c   : > { %2134 = sst [smem:[#allocation23_spill]] %s1483_s7  ;;  %s101_s14 = sadd.s32 1, %s1459_s26 }
  0x1d   : > { %s95_s12 = scalar_select %p94_p0, 1, 0 }
  0x1e   : > { %s97_s13 = scalar_select %p96_p1, 1, 0 }
  0x1f   : > { %p154_p4 = scmp.lt.s32.totalorder %s1487_s8, 1  ;;  %p1627_p5 = por %p114_p3, %p2086_p2 }
  0x20   : > { %s98_s15 = ssub.s32 %s95_s12, %s97_s13  ;;  %p171_p7 = scmp.ne.s32.totalorder %s1447_s23, %s1443_s22 }
  0x21   : > { %s2135_s16 = scalar_select %p1627_p5, 1, 0 }
  0x22   : > { %p99_p6 = scmp.eq.s32.totalorder %s98_s15, 0  ;;  %p172_p8 = scmp.eq.s32.totalorder %s1611_s9, 1 }
  0x23   : > { %2136 = sst [smem:[#allocation24_spill]] %s2135_s16  ;;  %p177_p9 = scmp.ne.s32.totalorder %s1443_s22, %s1439_s21 }
  0x24   : > { %s1636_s17 = scalar_select %p154_p4, %s1487_s8, 1 }
  0x25   : > { %s1639_s24 = scalar_select %p99_p6, %s1459_s26, %s101_s14  }
  0x26   : > { %p178_p10 = scmp.eq.s32.totalorder %s868_s10, 1  ;;  %p203_p11 = scmp.ne.s32.totalorder %s1435_s20, %s1431_s19 }
  0x27   : > { %2137 = sst [smem:[#allocation25_spill]] %s1639_s24  ;;  %p1646_p12 = por %p172_p8, %p171_p7 }
  0x28   : > { %p209_p13 = scmp.ne.s32.totalorder %s1431_s19, %s1427_s18  ;;  %p1652_p1 = por %p178_p10, %p177_p9 }
  0x29   : > { %s2138_s12 = scalar_select %p1646_p12, 1, 0 }
  0x2a   : > { %s2140_s13 = scalar_select %p1652_p1, 1, 0 }
  0x2b   : > { %2139 = sst [smem:[#allocation26_spill]] %s2138_s12  ;;  %p1656_p3 = por %p203_p11, %p172_p8 }
  0x2c   : > { %2141 = sst [smem:[#allocation27_spill]] %s2140_s13  ;;  %p1665_p6 = por %p209_p13, %p178_p10 }
  0x2d   : > { %s2142_s15 = scalar_select %p1656_p3, 1, 0 }
  0x2e   : > { %s1663_s14 = scalar_select %p154_p4, 1, %s1611_s9 }
  0x2f   : > { %2143 = sst [smem:[#allocation28_spill]] %s2142_s15  ;;  %p217_p7 = scmp.lt.s32.totalorder %s1487_s8, 3 }
  0x30   : > { %s2144_s10 = scalar_select %p1665_p6, 1, 0 }
  0x31   : > { %p2100_p2 = scmp.ge.s32.totalorder %s1611_s9, 1  ;;  %p1673_p12 = pnand %p217_p7, %p94_p0 }
  0x32   : > { %2145 = sst [smem:[#allocation29_spill]] %s2144_s10  ;;  %s1489_s26 = smov [#allocation7]  }
  0x33   : > { %s2146_s24 = scalar_select %p1673_p12, 1, 0 }
  0x34   : > { %s234_s25 = sshll.u32 %s1489_s26, 4  ;;  %p1018_p4 = pneg %p1673_p12  ;;  %s1683_s25 = int_to_ptr.vmem [resolvable:$true] %s234_s25 }
  0x35   : > { %s1679_s18 = scalar_select %p2100_p2, 1, 0 }
  0x36   : > { %s2148_s2 = sld [smem:[#allocation34_spill]]  ;;  %p1693_p0 = pnand %p1018_p4, %p1627_p5 }
  0x37   : > { %2147 = sst [smem:[#allocation30_spill]] %s1679_s18  ;;  %s916_s13 = sshll.u32 %s1679_s18, 10 }
  0x38   : > { %p1197_p10 = pneg %p1693_p0 }
  0x3c   : > { %s1689_s5 = scalar_lea.hbm %s2148_s2, %s916_s13  ;;  %s1200_s10 = scalar_lea.hbm %s2148_s2, 2048 }
  0x3d   : > { %s1195_s15 = scalar_lea.hbm %s1689_s5, 1024  ;;  %p1201_p7 = scmp.lt.u32.totalorder %s1689_s5, %s2148_s2 }
  0x3e   : > { %p1196_p9 = scmp.ne.s32.totalorder %s1689_s5, %s1195_s15  ;;  %p1202_p4 = scmp.lt.u32.totalorder %s1200_s10, %s1195_s15 }
  0x3f   : > { %p1204_p6 = scmp.lt.u32.totalorder %s1195_s15, %s1689_s5 }
  0x40   : > { %p1198_p11 = pnand %p1197_p10, %p1196_p9  ;;  %p1203_p2 = por %p1202_p4, %p1201_p7 }
  0x42   : > { %p1199_p13 = pneg %p1198_p11  ;;  %p1205_p8 = por %p1204_p6, %p1203_p2 }
  0x44   : > { %p1206_p1 = pnand %p1205_p8, %p1199_p13 }
  0x46   : > { %1209 = shalt.err (!%p1206_p1)
}
  0x47   : > { %s1210_s3 = scalar_lea.vmem %s1683_s25, 1024  ;;  %p1218_p5 = scmp.lt.s32.totalorder %s1683_s25, %s1683_s25 }
  0x48   : > { %p1211_p9 = scmp.ne.s32.totalorder %s1683_s25, %s1210_s3  ;;  %p1219_p12 = scmp.lt.s32.totalorder %s1210_s3, %s1210_s3 }
  0x4a   : > { %p1213_p11 = pnand %p1211_p9, %p1197_p10  ;;  %p1220_p4 = por %p1219_p12, %p1218_p5 }
  0x4c   : > { %p1214_p3 = pneg %p1213_p11 }
  0x4e   : > { %p1221_p7 = pnand %p1220_p4, %p1214_p3 }
  0x50   : > { %1224 = shalt.err (!%p1221_p7)
}
  0x51   : > { %s2105_s4 = smov 64   ;;  %s2107_s3 = smov 4  }
  0x52   : > { %1021 = dma.hbm_to_vmem [thread:$0]  (!%p1693_p0), %s1689_s5, 1024, %s1683_s25, [#allocation6], %s2105_s4, %s2105_s4, %s2107_s3  }
  0x53   : > { %p32_p2 = scmp.lt.s32.totalorder %s1487_s8, 0  ;;  %p34_p5 = scmp.lt.s32.totalorder %s1615_s11, 0 }
  0x54   : > { %s39_s12 = sadd.s32 1, %s1483_s7  ;;  %p46_p12 = scmp.ne.s32.totalorder %s1483_s7, %s1479_s6 }
  0x55   : > { %s33_s15 = scalar_select %p32_p2, %s1487_s8, 0 }
  0x56   : > { %s35_s21 = scalar_select %p34_p5, %s1615_s11, 0 }
  0x57   : > { %p2112_p1 = scmp.eq.s32.totalorder %s1487_s8, 0  ;;  %p52_p3 = scmp.ne.s32.totalorder %s1479_s6, %s1475_s30 }
  0x58   : > { %s36_s13 = ssub.s32 %s33_s15, %s35_s21  ;;  %p2150_p10 = scmp.eq.s32.totalorder %s1611_s9, 0 }
  0x59   : > { %p37_p6 = scmp.eq.s32.totalorder %s36_s13, 0  ;;  %p48_p8 = por %p2112_p1, %p46_p12 }
  0x5a   : > { %p1741_p13 = por %p2150_p10, %p52_p3  ;;  %p2111_p9 = scmp.lt.s32.totalorder %s1487_s8, 2 }
  0x5b   : > { %s1747_s5 = scalar_select %p37_p6, %s1483_s7, %s39_s12  }
  0x5c   : > { %s248_s25 = sand.u32 1, %s1483_s7   ;;  %s917_s10 = sshll.u32 %s33_s15, 7 }
  0x5d   : > { %2152 = sst [smem:[#allocation31_spill]] %s1747_s5  ;;  %s877_s4 = sshll.u32 %s248_s25, 3 }
  0x5e   : > { %s2153_s0 = sld [smem:[#allocation33_spill]]  ;;  %s252_s30 = scalar_lea.vmem [#allocation2], %s877_s4 }
  0x5f   : > { %s261_s21 = sshll.u32 %s252_s30, 4  ;;  %p1757_p0 = pnand %p2111_p9, %p48_p8  ;;  %s1761_s21 = int_to_ptr.vmem [resolvable:$true] %s261_s21 }
  0x60   : > { %s1763_s12 = scalar_lea.sflag [#allocation3], %s248_s25 }
  0x61   : > { %p1227_p4 = pneg %p1757_p0 }
  0x64   : > { %s1753_s18 = scalar_lea.hbm %s2153_s0, %s917_s10  ;;  %s1230_s15 = scalar_lea.hbm %s2153_s0, 128 }
  0x65   : > { %s1225_s2 = scalar_lea.hbm %s1753_s18, 128  ;;  %p1231_p5 = scmp.lt.u32.totalorder %s1753_s18, %s2153_s0 }
  0x66   : > { %p1226_p11 = scmp.ne.s32.totalorder %s1753_s18, %s1225_s2  ;;  %p1232_p12 = scmp.lt.u32.totalorder %s1230_s15, %s1225_s2 }
  0x67   : > { %p1234_p6 = scmp.lt.u32.totalorder %s1225_s2, %s1753_s18 }
  0x68   : > { %p1228_p7 = pnand %p1227_p4, %p1226_p11  ;;  %p1233_p3 = por %p1232_p12, %p1231_p5 }
  0x6a   : > { %p1229_p2 = pneg %p1228_p7  ;;  %p1235_p8 = por %p1234_p6, %p1233_p3 }
  0x6c   : > { %p1236_p10 = pnand %p1235_p8, %p1229_p2 }
  0x6e   : > { %1239 = shalt.err (!%p1236_p10)
}
  0x6f   : > { %s1240_s25 = scalar_lea.vmem %s1761_s21, 128  ;;  %s1492_s4 = smov [#allocation2]  }
  0x70   : > { %p1241_p11 = scmp.ne.s32.totalorder %s1761_s21, %s1240_s25  ;;  %s1245_s3 = sshll.u32 %s1492_s4, 4  ;;  %s1246_s3 = int_to_ptr.vmem [resolvable:$false] %s1245_s3 }
  0x71   : > { %s1247_s10 = scalar_lea.vmem %s1246_s3, 256  ;;  %p1248_p1 = scmp.lt.s32.totalorder %s1761_s21, %s1246_s3 }
  0x72   : > { %p1243_p7 = pnand %p1241_p11, %p1227_p4  ;;  %p1249_p5 = scmp.lt.s32.totalorder %s1247_s10, %s1240_s25 }
  0x74   : > { %p1244_p9 = pneg %p1243_p7  ;;  %p1250_p12 = por %p1249_p5, %p1248_p1 }
  0x76   : > { %p1251_p3 = pnand %p1250_p12, %p1244_p9 }
  0x78   : > { %1254 = shalt.err (!%p1251_p3)
}
  0x79   : > { %s2155_s2 = smov 4   ;;  %s2156_s15 = smov 64  }
  0x7a   : > { %1025 = dma.hbm_to_vmem [thread:$0]  (!%p1757_p0), %s1753_s18, 128, %s1761_s21, %s1763_s12, %s2156_s15, %s2156_s15, %s2155_s2  }
  0x7b   : > { %p63_p1 = scmp.gt.s32.totalorder %s1611_s9, 0  ;;  %s870_s13 = sadd.s32 4294967295, %s1615_s11 }
  0x7c   : > { %p66_p9 = scmp.gt.s32.totalorder %s870_s13, 0  ;;  %s71_s30 = sadd.s32 1, %s1471_s29 }
  0x7d   : > { %s64_s25 = scalar_select %p63_p1, %s1611_s9, 0 }
  0x7e   : > { %s67_s4 = scalar_select %p66_p9, %s870_s13, 0 }
  0x7f   : > { %p78_p4 = scmp.ne.s32.totalorder %s1471_s29, %s1467_s28  ;;  %p84_p2 = scmp.ne.s32.totalorder %s1467_s28, %s1463_s27 }
  0x80   : > { %s68_s3 = ssub.s32 %s64_s25, %s67_s4  ;;  %p156_p6 = scmp.lt.s32.totalorder %s1615_s11, 1 }
  0x81   : > { %s161_s10 = sadd.s32 1, %s1447_s23  ;;  %p69_p0 = scmp.eq.s32.totalorder %s68_s3, 0 }
  0x82   : > { %p2157_p8 = scmp.eq.s32.totalorder %s1487_s8, 0  ;;  %p2159_p11 = scmp.eq.s32.totalorder %s1611_s9, 0 }
  0x83   : > { %s1817_s27 = scalar_select %p69_p0, %s1471_s29, %s71_s30  }
  0x84   : > { %p1806_p10 = por %p78_p4, %p2157_p8  ;;  %p1812_p7 = por %p84_p2, %p2159_p11 }
  0x85   : > { %2161 = sst [smem:[#allocation32_spill]] %s1817_s27  ;;  %s2213_s13 = smov (%p156_p6, %s870_s13), 1 }
  0x86   : > { %s2160_s21 = scalar_select %p1812_p7, 1, 0 }
  0x87   : > { %s157_s12 = scalar_select %p156_p6, %s1615_s11, 1 }
  0x88   : > { %s193_s0 = sadd.s32 1, %s1435_s20  ;;  %s190_s3 = ssub.s32 %s1663_s14, %s2213_s13 }
  0x89   : > { %s158_s4 = ssub.s32 %s1636_s17, %s157_s12  ;;  %p191_p12 = scmp.eq.s32.totalorder %s190_s3, 0 }
  0x8a   : > { %p159_p5 = scmp.eq.s32.totalorder %s158_s4, 0  ;;  %s271_s5 = sand.u32 1, %s1487_s8  }
  0x8b   : > { %s1828_s19 = scalar_select %p191_p12, %s1435_s20, %s193_s0  }
  0x8c   : > { %s1825_s7 = scalar_select %p159_p5, %s1447_s23, %s161_s10  }
  0x8d   : > { %s273_s22 = sand.u32 1, %s1471_s29   ;;  %s918_s16 = smul.u32 384, %s64_s25 }
  0x8e   : > { %s1005_s28 = smul.u32 24, %s273_s22  ;;  %p2162_p3 = scmp.lt.s32.totalorder %s1487_s8, 2 }
  0x8f   : > { %s1842_s14 = scalar_lea.hbm %s2081_s1, %s918_s16  ;;  %s1846_s22 = scalar_lea.sflag [#allocation6], %s271_s5 }
  0x90   : > { %p1835_p1 = pnand %p2162_p3, %p1806_p10  ;;  %s275_s0 = scalar_lea.vmem [#allocation5], %s1005_s28 }
  0x91   : > { %s285_s13 = sshll.u32 %s275_s0, 4  ;;  %s1255_s25 = scalar_lea.hbm %s1842_s14, 384  ;;  %s1844_s13 = int_to_ptr.vmem [resolvable:$true] %s285_s13 }
  0x92   : > { %p1256_p9 = scmp.ne.s32.totalorder %s1842_s14, %s1255_s25  ;;  %p1257_p4 = pneg %p1835_p1 }
  0x93   : > { %s1260_s18 = scalar_lea.hbm %s2081_s1, 384  ;;  %p1261_p0 = scmp.lt.u32.totalorder %s1842_s14, %s2081_s1 }
  0x94   : > { %p1258_p2 = pnand %p1257_p4, %p1256_p9  ;;  %p1262_p8 = scmp.lt.u32.totalorder %s1260_s18, %s1255_s25 }
  0x95   : > { %p1264_p11 = scmp.lt.u32.totalorder %s1255_s25, %s1842_s14 }
  0x96   : > { %p1259_p6 = pneg %p1258_p2  ;;  %p1263_p10 = por %p1262_p8, %p1261_p0 }
  0x98   : > { %p1265_p5 = por %p1264_p11, %p1263_p10 }
  0x9a   : > { %p1266_p12 = pnand %p1265_p5, %p1259_p6 }
  0x9c   : > { %1269 = shalt.err (!%p1266_p12)
}
  0x9d   : > { %s1270_s28 = scalar_lea.vmem %s1844_s13, 384  ;;  %s1493_s5 = smov [#allocation5]  }
  0x9e   : > { %p1271_p3 = scmp.ne.s32.totalorder %s1844_s13, %s1270_s28  ;;  %s1275_s4 = sshll.u32 %s1493_s5, 4  ;;  %s1276_s4 = int_to_ptr.vmem [resolvable:$false] %s1275_s4 }
  0x9f   : > { %s1277_s3 = scalar_lea.vmem %s1276_s4, 768  ;;  %p1278_p7 = scmp.lt.s32.totalorder %s1844_s13, %s1276_s4 }
  0xa0   : > { %p1273_p9 = pnand %p1271_p3, %p1257_p4  ;;  %p1279_p0 = scmp.lt.s32.totalorder %s1277_s3, %s1270_s28 }
  0xa2   : > { %p1274_p2 = pneg %p1273_p9  ;;  %p1280_p8 = por %p1279_p0, %p1278_p7 }
  0xa4   : > { %p1281_p10 = pnand %p1280_p8, %p1274_p2 }
  0xa6   : > { %1284 = shalt.err (!%p1281_p10)
}
  0xa7   : > { %1028 = dma.hbm_to_vmem [thread:$0]  (!%p1835_p1), %s1842_s14, 384, %s1844_s13, %s1846_s22, %s2156_s15, %s2156_s15, %s2155_s2  }
  0xa8   : > { %p2164_p4 = scmp.ne.s32.totalorder %s2146_s24, 0 }
  0xa9   : > { %s309_s17 = sand.u32 (!%p2164_p4), 1, %s1479_s6  }
  0xaa   : > { %307 = sbr.rel (%p2164_p4) target bundleno = 767 (0x2ff), region = 36  ;;  %s1880_s0 = sshll.u32 (!%p2164_p4), %s309_s17, 3 }
  0xab   : > { %s310_s25 = scalar_lea.sflag (!%p2164_p4), [#allocation3], %s309_s17  ;;  %s313_s16 = scalar_lea.vmem (!%p2164_p4), [#allocation2], %s1880_s0 }
  0xb1   : > { %1406 = dma.done.wait (%p1741_p13), %s310_s25, 128  }
  0xb2   : > { %1408 = vsyncadd (%p1741_p13), %s310_s25, 4294967168  ;;  %s2165_s30 = sld [smem:[#allocation22_spill]]  ;;  %s318_s2 = sand.u32 1, %s1611_s9  }
  0xb3   : > { %s319_s14 = scalar_lea.sflag [#allocation6], %s318_s2  ;;  %p2166_p7 = scmp.ne.s32.totalorder %s2160_s21, 0 }
  0xb8   : > { %s320_s15 = sand.u32 1, %s2165_s30  }
  0xb9   : > { %s1006_s24 = smul.u32 24, %s320_s15 }
  0xbb   : > { %s1889_s13 = scalar_lea.vmem [#allocation5], %s1006_s24 }
  0xbc   : > { %1410 = dma.done.wait (%p2166_p7), %s319_s14, 384  }
  0xbd   : > { %1412 = vsyncadd (%p2166_p7), %s319_s14, 4294966912  ;;  %s2167_s22 = sld [smem:[#allocation24_spill]] }
  0xc3   : > { %p2168_p1 = scmp.ne.s32.totalorder %s2167_s22, 0 }
  0xc5   : > { %1414 = dma.done.wait (%p2168_p1), [#allocation6], 1024  }
  0xc6   : > { %1416 = vsyncadd (%p2168_p1), [#allocation6], 4294966272  ;;  %s2169_s26 = sld [smem:[#allocation19_spill]]  ;;  %s2170_s10 = sld [smem:[#allocation17_spill]] }
  0xc7   : > { %s2171_s18 = sld [smem:[#allocation30_spill]]  ;;  %s2172_s3 = sld [smem:[#allocation35_spill]] }
  0xc8   : > { %p2173_p6 = scmp.ge.s32.totalorder %s1611_s9, 1 }
  0xc9   : > { %v1175_v0 = vld [vmem:[#allocation7] sm:$0xff] (!%p2173_p6)   ;;  %v1494_v1 = vmov (!%p2173_p6), 0.0   ;;  %v1176_v2 = vld [vmem:[#allocation7 + $0x8] sm:$0xff] (!%p2173_p6)   ;;  %vm1495_vm0 = vmmov (!%p2173_p6), 0   ;;  %v1177_v3 = vld [vmem:[#allocation7 + $0x10] sm:$0xff] (!%p2173_p6)  }
  0xca   : > { %941 = vmatprep.subr.bf16.mxu0 (!%p2173_p6), %v1494_v1  ;;  %957 = vmatprep.mubr.msk.bf16.mxu0 (!%p2173_p6), %vm1495_vm0, %v1494_v1  ;;  %v1178_v4 = vld [vmem:[#allocation7 + $0x18] sm:$0xff] (!%p2173_p6)   ;;  %v1179_v5 = vld [vmem:[#allocation7 + $0x20] sm:$0xff] (!%p2173_p6)   ;;  %v1180_v6 = vld [vmem:[#allocation7 + $0x28] sm:$0xff] (!%p2173_p6)  }
  0xcb   : > { %395 = sbr.rel (%p2173_p6) target bundleno = 451 (0x1c3), region = 52  ;;  %942 = vmatpush3.bf16.msra.mxu0 (!%p2173_p6), %v1175_v0  ;;  %v1181_v7 = vld [vmem:[#allocation7 + $0x30] sm:$0xff] (!%p2173_p6)   ;;  %v1182_v8 = vld [vmem:[#allocation7 + $0x38] sm:$0xff] (!%p2173_p6)   ;;  %v1183_v9 = vld [vmem:[%s313_s16] sm:$0xff] (!%p2173_p6)  }
  0xcc   : > { %s358_s27 = sand.u32 1, %s2169_s26   ;;  %s365_s12 = sand.u32 1, %s2170_s10   ;;  %943 = vmatprep.subr.bf16.mxu0 (!%p2173_p6), %v1494_v1 }
  0xcd   : > { %s884_s28 = sshll.u32 %s358_s27, 4  ;;  %s1007_s5 = smul.u32 48, %s365_s12 }
  0xce   : > { %p379_p13 = scmp.lt.s32.totalorder %s2171_s18, 1  ;;  %s1912_s25 = scalar_lea.vmem [#allocation8], %s884_s28 }
  0xcf   : > { %s1914_s30 = scalar_lea.vmem [#allocation9], %s1007_s5  ;;  %944 = vmatpush3.bf16.msra.mxu0 (!%p2173_p6), %v1176_v2 }
  0xd0   : > { %s2215_s18 = smov (!%p379_p13, %s2171_s18), 1  ;;  %945 = vmatprep.subr.bf16.mxu0 (!%p2173_p6), %v1494_v1 }
  0xd1   : > { %s1910_s17 = scalar_lea.vmem %s2172_s3, %s2215_s18 }
  0xd2   : > { %v886_v10 = vld [vmem:[%s1910_s17] ss:$0 sm:$0xff] }
  0xd3   : > { %946 = vmatpush3.bf16.msra.mxu0 %v1177_v3 }
  0xd4   : > { %947 = vmatprep.subr.bf16.mxu0 %v1494_v1 }
  0xd7   : > { %948 = vmatpush3.bf16.msra.mxu0 %v1178_v4 }
  0xd8   : > { %949 = vmatprep.subr.bf16.mxu0 %v1494_v1 }
  0xdb   : > { %950 = vmatpush3.bf16.msra.mxu0 %v1179_v5 }
  0xdc   : > { %951 = vmatprep.subr.bf16.mxu0 %v1494_v1 }
  0xdf   : > { %952 = vmatpush3.bf16.msra.mxu0 %v1180_v6 }
  0xe0   : > { %953 = vmatprep.subr.bf16.mxu0 %v1494_v1 }
  0xe3   : > { %954 = vmatpush3.bf16.msra.mxu0 %v1181_v7 }
  0xe4   : > { %955 = vmatprep.subr.bf16.mxu0 %v1494_v1 }
  0xe7   : > { %956 = vmatpush3.bf16.msra.mxu0 %v1182_v8 }
  0xea   : > { %958 = vmatmul.mubr.bf16.vlgmr.msra.gmra.mrb[0].mxu0 %v1183_v9 }
 0x1bd   : > { %v509_v11 = vpop.f32.mrb[0].mxu0 }
 0x1be   : > { %v510_v12 = vadd.f32 %v886_v10, %v509_v11  ;;  %v959_v13 = vpop.f32.mrb[1].mxu0 }
 0x1bf   : > { %v512_v14 = vpop.f32.mrb[2].mxu0 }
 0x1c0   : > { %516 = vst [vmem:[%s1912_s25] sm:$0xff] %v510_v12  ;;  %v513_v15 = vadd.f32 %v886_v10, %v512_v14  ;;  %v960_v16 = vpop.f32.mrb[3].mxu0 }
 0x1c2   : > { %517 = vst [vmem:[%s1912_s25 + $0x8] sm:$0xff] %v513_v15 }
 0x1c3 PF: > { %p896_p11 = scmp.lt.s32.totalorder %s1611_s9, 1 }
 0x1c4   : > { %v1184_v17 = vld [vmem:[#allocation7] sm:$0xff] (!%p896_p11)   ;;  %v1496_v18 = vmov (!%p896_p11), 0.0   ;;  %v1185_v19 = vld [vmem:[#allocation7 + $0x8] sm:$0xff] (!%p896_p11)   ;;  %vm1497_vm1 = vmmov (!%p896_p11), 0   ;;  %v1186_v20 = vld [vmem:[#allocation7 + $0x10] sm:$0xff] (!%p896_p11)  }
 0x1c5   : > { %521 = sbr.rel (%p896_p11) target bundleno = 710 (0x2c6), region = 56  ;;  %989 = vmatprep.subr.bf16.mxu1 (!%p896_p11), %v1496_v18  ;;  %961 = vmatprep.subr.bf16.mxu0 (!%p896_p11), %v1496_v18  ;;  %v1187_v21 = vld [vmem:[#allocation7 + $0x18] sm:$0xff] (!%p896_p11)   ;;  %v1188_v22 = vld [vmem:[#allocation7 + $0x20] sm:$0xff] (!%p896_p11)   ;;  %v1189_v23 = vld [vmem:[#allocation7 + $0x28] sm:$0xff] (!%p896_p11)  }
 0x1c6   : > { %997 = vmatpush3.bf16.msra.mxu1 (!%p896_p11), %v1184_v17  ;;  %962 = vmatpush3.bf16.msra.mxu0 (!%p896_p11), %v1184_v17  ;;  %v1190_v24 = vld [vmem:[#allocation7 + $0x30] sm:$0xff] (!%p896_p11)   ;;  %v1191_v25 = vld [vmem:[#allocation7 + $0x38] sm:$0xff] (!%p896_p11)   ;;  %v897_v29 = vld [vmem:[%s1910_s17] ss:$0 sm:$0xff] (!%p896_p11) }
 0x1c7   : > { %990 = vmatprep.subr.bf16.mxu1 (!%p896_p11), %v1496_v18  ;;  %963 = vmatprep.subr.bf16.mxu0 (!%p896_p11), %v1496_v18  ;;  %v1192_v26 = vld [vmem:[%s1889_s13 + $0x8] sm:$0xff] (!%p896_p11)   ;;  %v1193_v27 = vld [vmem:[%s1889_s13] sm:$0xff] (!%p896_p11)   ;;  %v1194_v28 = vld [vmem:[%s1889_s13 + $0x10] sm:$0xff] (!%p896_p11)  }
 0x1c8   : > { %981 = vmatprep.mubr.msk.bf16.mxu1 (!%p896_p11), %vm1497_vm1, %v1496_v18  ;;  %977 = vmatprep.mubr.msk.bf16.mxu0 (!%p896_p11), %vm1497_vm1, %v1496_v18 }
 0x1ca   : > { %998 = vmatpush3.bf16.msra.mxu1 (!%p896_p11), %v1185_v19  ;;  %964 = vmatpush3.bf16.msra.mxu0 (!%p896_p11), %v1185_v19 }
 0x1cb   : > { %991 = vmatprep.subr.bf16.mxu1 (!%p896_p11), %v1496_v18  ;;  %965 = vmatprep.subr.bf16.mxu0 (!%p896_p11), %v1496_v18 }
 0x1ce   : > { %999 = vmatpush3.bf16.msra.mxu1 %v1186_v20  ;;  %966 = vmatpush3.bf16.msra.mxu0 %v1186_v20 }
 0x1cf   : > { %992 = vmatprep.subr.bf16.mxu1 %v1496_v18  ;;  %967 = vmatprep.subr.bf16.mxu0 %v1496_v18 }
 0x1d2   : > { %1000 = vmatpush3.bf16.msra.mxu1 %v1187_v21  ;;  %968 = vmatpush3.bf16.msra.mxu0 %v1187_v21 }
 0x1d3   : > { %993 = vmatprep.subr.bf16.mxu1 %v1496_v18  ;;  %969 = vmatprep.subr.bf16.mxu0 %v1496_v18 }
 0x1d6   : > { %1001 = vmatpush3.bf16.msra.mxu1 %v1188_v22  ;;  %970 = vmatpush3.bf16.msra.mxu0 %v1188_v22 }
 0x1d7   : > { %994 = vmatprep.subr.bf16.mxu1 %v1496_v18  ;;  %971 = vmatprep.subr.bf16.mxu0 %v1496_v18 }
 0x1da   : > { %1002 = vmatpush3.bf16.msra.mxu1 %v1189_v23  ;;  %972 = vmatpush3.bf16.msra.mxu0 %v1189_v23 }
 0x1db   : > { %995 = vmatprep.subr.bf16.mxu1 %v1496_v18  ;;  %973 = vmatprep.subr.bf16.mxu0 %v1496_v18 }
 0x1de   : > { %1003 = vmatpush3.bf16.msra.mxu1 %v1190_v24  ;;  %974 = vmatpush3.bf16.msra.mxu0 %v1190_v24 }
 0x1df   : > { %996 = vmatprep.subr.bf16.mxu1 %v1496_v18  ;;  %975 = vmatprep.subr.bf16.mxu0 %v1496_v18 }
 0x1e2   : > { %1004 = vmatpush3.bf16.msra.mxu1 %v1191_v25  ;;  %976 = vmatpush3.bf16.msra.mxu0 %v1191_v25 }
 0x1e5   : > { %982 = vmatmul.mubr.bf16.vlgmr.msra.gmra.mrb[0].mxu1 %v1192_v26  ;;  %978 = vmatmul.mubr.bf16.vlgmr.msra.gmra.mrb[0].mxu0 %v1193_v27 }
 0x1e6   : > { %985 = vmatprep.mubr.msk.bf16.mxu1 %vm1497_vm1, %v1496_v18 }
 0x1ed   : > { %986 = vmatmul.mubr.bf16.gmra.mrb[4].mxu1 %v1194_v28 }
 0x2b8   : > { %v659_v30 = vpop.f32.mrb[0].mxu1  ;;  %v651_v31 = vpop.f32.mrb[0].mxu0 }
 0x2b9   : > { %v660_v32 = vadd.f32 %v897_v29, %v659_v30  ;;  %v983_v33 = vpop.f32.mrb[1].mxu1  ;;  %v652_v34 = vadd.f32 %v897_v29, %v651_v31  ;;  %v979_v35 = vpop.f32.mrb[1].mxu0 }
 0x2ba   : > { %v662_v36 = vpop.f32.mrb[2].mxu1  ;;  %v654_v37 = vpop.f32.mrb[2].mxu0 }
 0x2bb   : > { %676 = vst [vmem:[%s1914_s30 + $0x10] sm:$0xff] %v660_v32  ;;  %v663_v38 = vadd.f32 %v897_v29, %v662_v36  ;;  %v984_v39 = vpop.f32.mrb[3].mxu1  ;;  %674 = vst [vmem:[%s1914_s30] sm:$0xff] %v652_v34  ;;  %v655_v40 = vadd.f32 %v897_v29, %v654_v37  ;;  %v980_v41 = vpop.f32.mrb[3].mxu0 }
 0x2bd   : > { %677 = vst [vmem:[%s1914_s30 + $0x18] sm:$0xff] %v663_v38  ;;  %675 = vst [vmem:[%s1914_s30 + $0x8] sm:$0xff] %v655_v40 }
 0x2c0   : > { %v667_v42 = vpop.f32.mrb[4].mxu1 }
 0x2c1   : > { %v668_v43 = vadd.f32 %v897_v29, %v667_v42  ;;  %v987_v44 = vpop.f32.mrb[5].mxu1 }
 0x2c2   : > { %v670_v45 = vpop.f32.mrb[6].mxu1 }
 0x2c3   : > { %678 = vst [vmem:[%s1914_s30 + $0x20] sm:$0xff] %v668_v43  ;;  %v671_v46 = vadd.f32 %v897_v29, %v670_v45  ;;  %v988_v47 = vpop.f32.mrb[7].mxu1 }
 0x2c5   : > { %679 = vst [vmem:[%s1914_s30 + $0x28] sm:$0xff] %v671_v46 }
 0x2c6 PF: > { %s2175_s16 = sld [smem:[#allocation26_spill]]  ;;  %s701_s2 = sshll.u32 %s1912_s25, 4  ;;  %s1943_s2 = int_to_ptr.vmem [resolvable:$true] %s701_s2 }
 0x2c7   : > { %s694_s15 = scalar_select %p896_p11, %s1611_s9, 1 }
 0x2c8   : > { %s2176_s22 = sld [smem:[#allocation36_spill]]  ;;  %s1952_s18 = scalar_lea.sflag [#allocation4], %s358_s27 }
 0x2c9   : > { %s919_s24 = sshll.u32 %s694_s15, 8  ;;  %s1285_s28 = scalar_lea.vmem %s1943_s2, 256 }
 0x2ca   : > { %p1286_p5 = scmp.ne.s32.totalorder %s1943_s2, %s1285_s28  ;;  %s1498_s5 = smov [#allocation8]  }
 0x2cb   : > { %s1289_s21 = sshll.u32 %s1498_s5, 4  ;;  %s1290_s21 = int_to_ptr.vmem [resolvable:$false] %s1289_s21 }
 0x2cc   : > { %p2178_p12 = scmp.ne.s32.totalorder %s2175_s16, 0  ;;  %s1291_s4 = scalar_lea.vmem %s1290_s21, 512 }
 0x2cd   : > { %p1292_p2 = scmp.lt.s32.totalorder %s1943_s2, %s1290_s21  ;;  %p1293_p0 = scmp.lt.s32.totalorder %s1291_s4, %s1285_s28 }
 0x2ce   : > { %s2177_s10 = smov %s2176_s22  ;;  %s1948_s26 = scalar_lea.hbm %s2176_s22, %s919_s24 }
 0x2cf   : > { %p1287_p3 = pnand %p1286_p5, %p2178_p12  ;;  %p1294_p8 = por %p1293_p0, %p1292_p2 }
 0x2d1   : > { %p1288_p9 = pneg %p1287_p3 }
 0x2d3   : > { %p1295_p10 = pnand %p1294_p8, %p1288_p9 }
 0x2d5   : > { %1298 = shalt.err (!%p1295_p10)
}
 0x2d6   : > { %s1299_s27 = scalar_lea.hbm %s1948_s26, 256  ;;  %s1303_s25 = scalar_lea.hbm %s2177_s10, 512 }
 0x2d7   : > { %p1300_p4 = scmp.ne.s32.totalorder %s1948_s26, %s1299_s27  ;;  %p1304_p13 = scmp.lt.u32.totalorder %s1948_s26, %s2177_s10 }
 0x2d8   : > { %p1305_p6 = scmp.lt.u32.totalorder %s1303_s25, %s1299_s27  ;;  %p1307_p3 = scmp.lt.u32.totalorder %s1299_s27, %s1948_s26 }
 0x2d9   : > { %p1301_p7 = pnand %p1300_p4, %p2178_p12 }
 0x2da   : > { %p1306_p5 = por %p1305_p6, %p1304_p13 }
 0x2db   : > { %p1302_p1 = pneg %p1301_p7 }
 0x2dc   : > { %p1308_p9 = por %p1307_p3, %p1306_p5 }
 0x2de   : > { %p1309_p2 = pnand %p1308_p9, %p1302_p1 }
 0x2e0   : > { %1312 = shalt.err (!%p1309_p2)
}
 0x2e1   : > { %s1499_s24 = smov 128   ;;  %s2180_s13 = sld [smem:[#allocation28_spill]] }
 0x2e2   : > { %s1500_s22 = smov 8   ;;  %s912_s28 = sadd.s32 4294967295, %s1611_s9 }
 0x2e3   : > { %1014 = dma.vmem_to_hbm [thread:$0]  (%p2178_p12), %s1943_s2, 256, %s1948_s26, %s1952_s18, %s1499_s24, %s1499_s24, %s1500_s22  }
 0x2e4   : > { %s720_s5 = sshll.u32 %s1914_s30, 4  ;;  %s2217_s28 = smov (%p896_p11, %s912_s28), 1  ;;  %s1983_s5 = int_to_ptr.vmem [resolvable:$true] %s720_s5 }
 0x2e5   : > { %s920_s21 = smul.u32 768, %s2217_s28  ;;  %s2181_s3 = sld [smem:[#allocation37_spill]] }
 0x2e6   : > { %s1992_s16 = scalar_lea.sflag [#allocation10], %s365_s12  ;;  %s1313_s25 = scalar_lea.vmem %s1983_s5, 768 }
 0x2e7   : > { %p1314_p12 = scmp.ne.s32.totalorder %s1983_s5, %s1313_s25  ;;  %p2182_p0 = scmp.ne.s32.totalorder %s2180_s13, 0 }
 0x2e8   : > { %s1501_s9 = smov [#allocation9]  }
 0x2e9   : > { %p1315_p8 = pnand %p1314_p12, %p2182_p0  ;;  %s1317_s30 = sshll.u32 %s1501_s9, 4  ;;  %s1318_s30 = int_to_ptr.vmem [resolvable:$false] %s1317_s30 }
 0x2ea   : > { %s1319_s2 = scalar_lea.vmem %s1318_s30, 1536  ;;  %p1320_p11 = scmp.lt.s32.totalorder %s1983_s5, %s1318_s30 }
 0x2eb   : > { %s1988_s17 = scalar_lea.hbm %s2181_s3, %s920_s21  ;;  %p1316_p10 = pneg %p1315_p8 }
 0x2ec   : > { %p1321_p4 = scmp.lt.s32.totalorder %s1319_s2, %s1313_s25 }
 0x2ee   : > { %p1322_p7 = por %p1321_p4, %p1320_p11 }
 0x2f0   : > { %p1323_p1 = pnand %p1322_p7, %p1316_p10 }
 0x2f2   : > { %1326 = shalt.err (!%p1323_p1)
}
 0x2f3   : > { %s1327_s12 = scalar_lea.hbm %s1988_s17, 768  ;;  %s1331_s0 = scalar_lea.hbm %s2181_s3, 1536 }
 0x2f4   : > { %p1328_p13 = scmp.ne.s32.totalorder %s1988_s17, %s1327_s12  ;;  %p1332_p3 = scmp.lt.u32.totalorder %s1988_s17, %s2181_s3 }
 0x2f5   : > { %p1333_p9 = scmp.lt.u32.totalorder %s1331_s0, %s1327_s12  ;;  %p1335_p12 = scmp.lt.u32.totalorder %s1327_s12, %s1988_s17 }
 0x2f6   : > { %p1329_p6 = pnand %p1328_p13, %p2182_p0 }
 0x2f7   : > { %p1334_p2 = por %p1333_p9, %p1332_p3 }
 0x2f8   : > { %p1330_p5 = pneg %p1329_p6 }
 0x2f9   : > { %p1336_p8 = por %p1335_p12, %p1334_p2 }
 0x2fb   : > { %p1337_p10 = pnand %p1336_p8, %p1330_p5 }
 0x2fd   : > { %1340 = shalt.err (!%p1337_p10)
}
 0x2fe   : > { %1015 = dma.vmem_to_hbm [thread:$0]  (%p2182_p0), %s1983_s5, 768, %s1988_s17, %s1992_s16, %s1499_s24, %s1499_s24, %s1500_s22  }
 0x2ff PF: > { %s2183_s28 = sld [smem:[#allocation18_spill]]  ;;  %s2184_s21 = sld [smem:[#allocation27_spill]] }
 0x300   : > { %p2186_p4 = scmp.ge.s32.totalorder %s1487_s8, 2 }
 0x305   : > { %s735_s4 = sand.u32 1, %s2183_s28   ;;  %p2185_p11 = scmp.ne.s32.totalorder %s2184_s21, 0 }
 0x306   : > { %s736_s27 = scalar_lea.sflag [#allocation4], %s735_s4 }
 0x307   : > { %p1030_p7 = pnand %p2186_p4, %p2185_p11 }
 0x309   : > { %1418 = dma.done.wait (!%p1030_p7), %s736_s27, 256  }
 0x30a   : > { %1420 = vsyncadd (!%p1030_p7), %s736_s27, 4294967040  ;;  %s2187_s25 = sld [smem:[#allocation16_spill]]  ;;  %s2188_s13 = sld [smem:[#allocation29_spill]] }
 0x30b   : > { %p2190_p13 = pmov %p2186_p4 }
 0x310   : > { %s744_s9 = sand.u32 1, %s2187_s25   ;;  %p2189_p1 = scmp.ne.s32.totalorder %s2188_s13, 0 }
 0x311   : > { %s745_s30 = scalar_lea.sflag [#allocation10], %s744_s9 }
 0x312   : > { %p1033_p6 = pnand %p2190_p13, %p2189_p1 }
 0x314   : > { %1422 = dma.done.wait (!%p1033_p6), %s745_s30, 768  }
 0x315   : > { %1424 = vsyncadd (!%p1033_p6), %s745_s30, 4294966528  ;;  %s2191_s18 = sld [smem:[#allocation17_spill]]  ;;  %s2192_s24 = smov %s1828_s19 }
 0x316   : > { %s2193_s21 = sld [smem:[#allocation19_spill]]  ;;  %s2194_s5 = sld [smem:[#allocation20_spill]] }
 0x317   : > { %s2195_s25 = sld [smem:[#allocation21_spill]]  ;;  %s2196_s26 = sld [smem:[#allocation25_spill]] }
 0x318   : > { %s2197_s27 = sld [smem:[#allocation22_spill]]  ;;  %s2198_s17 = sld [smem:[#allocation32_spill]] }
 0x319   : > { %s2199_s16 = sld [smem:[#allocation23_spill]]  ;;  %s2200_s8 = sld [smem:[#allocation31_spill]] }
 0x31a   : > { %p25_p0 = scmp.ge.s32.totalorder %s1615_s11, 4   ;;  %s2201_s19 = smov %s1435_s20 }
 0x31b   : > { %s2202_s20 = smov %s2192_s24  ;;  %s2203_s22 = smov %s1447_s23 }
 0x31c   : > { %s2204_s23 = smov %s1825_s7  ;;  %s2205_s24 = smov %s2194_s5 }
 0x31d   : > { %s2206_s28 = smov %s1471_s29  ;;  %s2208_s30 = smov %s1479_s6 }
 0x31e   : > { %s2207_s29 = smov %s2198_s17  ;;  %27 = sbr.rel (!%p25_p0) target bundleno = 21 (0x15), region = 127 }
 0x31f   : > { %s2209_s6 = smov %s2199_s16  ;;  %s2210_s7 = smov %s2200_s8 }
 0x320   : > { %s2211_s8 = smov %s1615_s11 }
 0x325   :  { %750 = vsyncpa [#allocation3], 1 }
 0x326   :  { %752 = vsyncpa [#allocation3 + $0x1], 1 }
 0x327   :  { %753 = vsyncpa [#allocation6], 1 }
 0x328   :  { %755 = vsyncpa [#allocation6 + $0x1], 1 }
 0x329   :  { %756 = vsyncpa [#allocation4], 1 }
 0x32a   :  { %758 = vsyncpa [#allocation4 + $0x1], 1 }
 0x32b   :  { %759 = vsyncpa [#allocation10], 1 }
 0x32c   :  { %761 = vsyncpa [#allocation10 + $0x1], 1 }

</bundles_post_ra>
